<compile_context>
chip_gen: v5e
topology: v5e:2x2
jax: 0.10.0
libtpu: 0.0.40
codegen_flags: <defaults>
</compile_context>

<pallas_src>
import jax
import jax.numpy as jnp
from jax.experimental import pallas as pl
from jax.experimental.pallas import tpu as pltpu

SELU_ALPHA = 1.6732632423543772  # torch.nn.SELU constants
SELU_SCALE = 1.0507009873554805


def _round_up(x, m):
    return ((x + m - 1) // m) * m


def _unit_selu(a):
    # SELU without the outer scale (scale is folded into the next weight matrix).
    return jnp.where(a > 0, a, SELU_ALPHA * (jnp.exp(a) - 1.0))


def make_snn_kernel(num_hidden):
    """Build a kernel for `num_hidden` bias-free Linear+SELU layers + final Linear."""

    def kernel(*refs):
        x_ref = refs[0]
        w_refs = refs[1:1 + num_hidden]           # hidden weights (scale-folded)
        wf_ref = refs[1 + num_hidden]             # final weight, lane-padded
        bf_ref = refs[2 + num_hidden]             # final bias,  lane-padded
        out_ref = refs[3 + num_hidden]

        h = x_ref[...]                            # (TB, n_in)
        for w_ref in w_refs:
            a = jnp.dot(h, w_ref[...], preferred_element_type=jnp.float32)
            h = _unit_selu(a)                     # AlphaDropout: identity at inference
        out = jnp.dot(h, wf_ref[...], preferred_element_type=jnp.float32) + bf_ref[...]
        out_ref[...] = out.astype(out_ref.dtype)

    return kernel


def snn_forward(X, w_list, wf, bf, n_out, *, tile_b=None):
    """Run the SNN forward pass.

    X:       (B, n_in) float32
    w_list:  list of (in_i, out_i) hidden weights, SELU scale already folded in
    wf:      (H_last, n_out_pad) final weight, zero-padded columns, scale folded in
    bf:      (1, n_out_pad) final bias, zero-padded
    n_out:   true output width (columns to slice out)
    """
    B, n_in = X.shape
    n_out_pad = wf.shape[1]

    if tile_b is None:
        # Large tiles amortize the ~0.35us/step pipeline overhead and fill the MXU
        # M dimension. 512 is a good default on v6e/v7x; v5e saturates by ~128-512.
        tile_b = min(512, _round_up(max(B, 8), 8))
    tile_b = _round_up(tile_b, 8)

    B_pad = _round_up(B, tile_b)
    if B_pad != B:
        X = jnp.pad(X, ((0, B_pad - B), (0, 0)))
    grid = (B_pad // tile_b,)

    def full(shape):
        return pl.BlockSpec(shape, lambda i: (0, 0))

    in_specs = [pl.BlockSpec((tile_b, n_in), lambda i: (i, 0))]   # X batch tile
    in_specs += [full(w.shape) for w in w_list]                   # hidden weights (VMEM-resident)
    in_specs += [full(wf.shape), full(bf.shape)]                  # final weight / bias

    out = pl.pallas_call(
        make_snn_kernel(len(w_list)),
        out_shape=jax.ShapeDtypeStruct((B_pad, n_out_pad), X.dtype),
        grid_spec=pltpu.PrefetchScalarGridSpec(
            num_scalar_prefetch=0,
            grid=grid,
            in_specs=in_specs,
            out_specs=pl.BlockSpec((tile_b, n_out_pad), lambda i: (i, 0)),
        ),
        compiler_params=pltpu.CompilerParams(
            dimension_semantics=("parallel",)),
    )(X, *w_list, wf, bf)

    return out[:B, :n_out]


# ----------------------------------------------------------------------------
# Parameter construction (mirrors SNN.reset_parameters) and reference forward.
# ----------------------------------------------------------------------------

def make_params(key, n_in, hidden_size, n_out, num_init_features=None):
    """Raw PyTorch-layout weights: W is (out_features, in_features)."""
    used_hidden = list(hidden_size[:-1])  # SNN only uses hidden_size[:-1]
    assert len(used_hidden) >= 1
    num_keys = len(used_hidden) + 3
    keys = jax.random.split(key, num_keys)

    def linear_w(k, out_f, in_f):
        return jax.random.normal(k, (out_f, in_f), jnp.float32) * (float(out_f) ** -0.5)

    W_init = None
    feat = n_in
    if num_init_features is not None:
        W_init = linear_w(keys[-3], num_init_features, n_in)
        feat = num_init_features

    Ws = []
    for i, h in enumerate(used_hidden):
        Ws.append(linear_w(keys[i], h, feat))
        feat = h

    Wf = linear_w(keys[-2], n_out, feat)
    bound = float(feat) ** -0.5
    bf = jax.random.uniform(keys[-1], (n_out,), jnp.float32, -bound, bound)

    return {"W_init": W_init, "Ws": Ws, "Wf": Wf, "bf": bf}


def prepare_kernel_params(raw):
    """Kernel-side layouts: (in, out) weights, SELU scale folded downstream,
    initial bias-free Linear folded into the first hidden weight, lane-padded output."""
    Ws, W_init, Wf, bf = raw["Ws"], raw["W_init"], raw["Wf"], raw["bf"]

    W0 = Ws[0]
    if W_init is not None:
        # No activation between the init Linear and dense0 -> exact fold.
        W0 = W0 @ W_init

    w_list = [W0.T]                                    # (n_in, H0), unscaled (input is raw X)
    for W in Ws[1:]:
        w_list.append(SELU_SCALE * W.T)                # absorbs the preceding SELU scale

    n_out = Wf.shape[0]
    H_last = Wf.shape[1]
    n_out_pad = _round_up(n_out, 128)                  # lane-dense output stores
    wf = jnp.zeros((H_last, n_out_pad), jnp.float32).at[:, :n_out].set(SELU_SCALE * Wf.T)
    bf_p = jnp.zeros((1, n_out_pad), jnp.float32).at[0, :n_out].set(bf)
    return w_list, wf, bf_p, n_out


def reference_forward(X, raw):
    """Pure-JAX reference of the PyTorch eval-mode forward."""
    h = X
    if raw["W_init"] is not None:
        h = h @ raw["W_init"].T
    for W in raw["Ws"]:
        a = h @ W.T
        h = SELU_SCALE * _unit_selu(a)
    return h @ raw["Wf"].T + raw["bf"][None, :]


if __name__ == "__main__":
    # Small, module-consistent shapes. B=250 exercises the padded (non-divisible) path.
    B, n_in, hidden, n_out = 250, 32, (64, 64, 64), 1

    key = jax.random.PRNGKey(0)
    kx, kp = jax.random.split(key)
    X = jax.random.normal(kx, (B, n_in), jnp.float32)

    raw = make_params(kp, n_in, hidden, n_out)
    w_list, wf, bf, n_out_real = prepare_kernel_params(raw)

    out = snn_forward(X, w_list, wf, bf, n_out_real, tile_b=128)
    out = jax.block_until_ready(out)

    ref = reference_forward(X, raw)
    assert out.shape == (B, n_out)
    max_err = jnp.max(jnp.abs(out - ref))
    assert jnp.allclose(out, ref, atol=1e-4, rtol=1e-4), f"max err {max_err}"
    print("KERNEL_OK")
</pallas_src>

<mosaic_0001>
module attributes {stable_mosaic.version = 11 : i64} {
  func.func @kernel(%arg0: i32, %arg1: memref<128x32xf32, #tpu.memory_space<vmem>>, %arg2: memref<32x64xf32, #tpu.memory_space<vmem>>, %arg3: memref<64x64xf32, #tpu.memory_space<vmem>>, %arg4: memref<64x128xf32, #tpu.memory_space<vmem>>, %arg5: memref<1x128xf32, #tpu.memory_space<vmem>>, %arg6: memref<128x128xf32, #tpu.memory_space<vmem>>) attributes {dimension_semantics = [#tpu.dimension_semantics<parallel>], iteration_bounds = array<i64: 2>, scalar_prefetch = 0 : i64, scratch_operands = 0 : i64, tpu.core_type = #tpu.core_type<tc>, window_params = [{transform_indices = @transform_0, window_bounds = array<i64: 128, 32>}, {pipeline_mode = #tpu.pipeline_mode<synchronous>, transform_indices = @transform_1, window_bounds = array<i64: 32, 64>}, {pipeline_mode = #tpu.pipeline_mode<synchronous>, transform_indices = @transform_2, window_bounds = array<i64: 64, 64>}, {pipeline_mode = #tpu.pipeline_mode<synchronous>, transform_indices = @transform_3, window_bounds = array<i64: 64, 128>}, {pipeline_mode = #tpu.pipeline_mode<synchronous>, transform_indices = @transform_4, window_bounds = array<i64: 1, 128>}, {transform_indices = @transform_5, window_bounds = array<i64: 128, 128>}]} {
    %c0 = arith.constant 0 : index
    %c0_0 = arith.constant 0 : index
    %0 = vector.load %arg1[%c0, %c0_0] : memref<128x32xf32, #tpu.memory_space<vmem>>, vector<128x32xf32>
    %c0_1 = arith.constant 0 : index
    %c0_2 = arith.constant 0 : index
    %1 = vector.load %arg2[%c0_1, %c0_2] : memref<32x64xf32, #tpu.memory_space<vmem>>, vector<32x64xf32>
    %cst = arith.constant dense<0.000000e+00> : vector<128x64xf32>
    %2 = tpu.matmul %0, %1, %cst {dimension_numbers = #tpu.dot_dimension_numbers<[1], [0], [0], [1], [0, 0, 1, 1], [], []>} : vector<128x32xf32>, vector<32x64xf32>, vector<128x64xf32> -> vector<128x64xf32>
    %cst_3 = arith.constant 0.000000e+00 : f32
    %3 = vector.broadcast %cst_3 : f32 to vector<128x64xf32>
    %4 = arith.cmpf ogt, %2, %3 : vector<128x64xf32>
    %5 = math.exp %2 : vector<128x64xf32>
    %cst_4 = arith.constant 1.000000e+00 : f32
    %6 = vector.broadcast %cst_4 : f32 to vector<128x64xf32>
    %7 = arith.subf %5, %6 : vector<128x64xf32>
    %cst_5 = arith.constant 1.67326319 : f32
    %8 = vector.broadcast %cst_5 : f32 to vector<128x64xf32>
    %9 = arith.mulf %8, %7 : vector<128x64xf32>
    %10 = arith.select %4, %2, %9 : vector<128x64xi1>, vector<128x64xf32>
    %c0_6 = arith.constant 0 : index
    %c0_7 = arith.constant 0 : index
    %11 = vector.load %arg3[%c0_6, %c0_7] : memref<64x64xf32, #tpu.memory_space<vmem>>, vector<64x64xf32>
    %cst_8 = arith.constant dense<0.000000e+00> : vector<128x64xf32>
    %12 = tpu.matmul %10, %11, %cst_8 {dimension_numbers = #tpu.dot_dimension_numbers<[1], [0], [0], [1], [0, 0, 1, 1], [], []>} : vector<128x64xf32>, vector<64x64xf32>, vector<128x64xf32> -> vector<128x64xf32>
    %cst_9 = arith.constant 0.000000e+00 : f32
    %13 = vector.broadcast %cst_9 : f32 to vector<128x64xf32>
    %14 = arith.cmpf ogt, %12, %13 : vector<128x64xf32>
    %15 = math.exp %12 : vector<128x64xf32>
    %cst_10 = arith.constant 1.000000e+00 : f32
    %16 = vector.broadcast %cst_10 : f32 to vector<128x64xf32>
    %17 = arith.subf %15, %16 : vector<128x64xf32>
    %cst_11 = arith.constant 1.67326319 : f32
    %18 = vector.broadcast %cst_11 : f32 to vector<128x64xf32>
    %19 = arith.mulf %18, %17 : vector<128x64xf32>
    %20 = arith.select %14, %12, %19 : vector<128x64xi1>, vector<128x64xf32>
    %c0_12 = arith.constant 0 : index
    %c0_13 = arith.constant 0 : index
    %21 = vector.load %arg4[%c0_12, %c0_13] : memref<64x128xf32, #tpu.memory_space<vmem>>, vector<64x128xf32>
    %cst_14 = arith.constant dense<0.000000e+00> : vector<128x128xf32>
    %22 = tpu.matmul %20, %21, %cst_14 {dimension_numbers = #tpu.dot_dimension_numbers<[1], [0], [0], [1], [0, 0, 1, 1], [], []>} : vector<128x64xf32>, vector<64x128xf32>, vector<128x128xf32> -> vector<128x128xf32>
    %c0_15 = arith.constant 0 : index
    %c0_16 = arith.constant 0 : index
    %23 = vector.load %arg5[%c0_15, %c0_16] : memref<1x128xf32, #tpu.memory_space<vmem>>, vector<1x128xf32>
    %24 = vector.broadcast %23 : vector<1x128xf32> to vector<128x128xf32>
    %25 = arith.addf %22, %24 : vector<128x128xf32>
    %c0_17 = arith.constant 0 : index
    %c0_18 = arith.constant 0 : index
    %26 = vector.load %arg6[%c0_17, %c0_18] : memref<128x128xf32, #tpu.memory_space<vmem>>, vector<128x128xf32>
    tpu.vector_store %arg6[%c0_17, %c0_18], %25 {strides = array<i32>} : memref<128x128xf32, #tpu.memory_space<vmem>>, vector<128x128xf32>,
    return
  }
  func.func @transform_0(%arg0: i32) -> (i32, i32) {
    %c0_i32 = arith.constant 0 : i32
    %c0_i32_0 = arith.constant 0 : i32
    return %arg0, %c0_i32 : i32, i32
  }
  func.func @transform_1(%arg0: i32) -> (i32, i32) {
    %c0_i32 = arith.constant 0 : i32
    %c0_i32_0 = arith.constant 0 : i32
    %c0_i32_1 = arith.constant 0 : i32
    return %c0_i32, %c0_i32_0 : i32, i32
  }
  func.func @transform_2(%arg0: i32) -> (i32, i32) {
    %c0_i32 = arith.constant 0 : i32
    %c0_i32_0 = arith.constant 0 : i32
    %c0_i32_1 = arith.constant 0 : i32
    return %c0_i32, %c0_i32_0 : i32, i32
  }
  func.func @transform_3(%arg0: i32) -> (i32, i32) {
    %c0_i32 = arith.constant 0 : i32
    %c0_i32_0 = arith.constant 0 : i32
    %c0_i32_1 = arith.constant 0 : i32
    return %c0_i32, %c0_i32_0 : i32, i32
  }
  func.func @transform_4(%arg0: i32) -> (i32, i32) {
    %c0_i32 = arith.constant 0 : i32
    %c0_i32_0 = arith.constant 0 : i32
    %c0_i32_1 = arith.constant 0 : i32
    return %c0_i32, %c0_i32_0 : i32, i32
  }
  func.func @transform_5(%arg0: i32) -> (i32, i32) {
    %c0_i32 = arith.constant 0 : i32
    %c0_i32_0 = arith.constant 0 : i32
    return %arg0, %c0_i32 : i32, i32
  }
}

</mosaic_0001>

<bundles_post_ra>
// kernel: tpu_custom_call.1
= control target key start
LH: loop header
LB: loop body
LE: loop exit
PB: predicated region body
PF: predicated region fallthrough
CT: control target
= control target key end

     0   :  { %10 = vsyncpa [#allocation3], 0  ;;  %s1444_s0 = inlined_call_operand.vmem [shape: f32[256,32], index: 0, kind: input, shape index: {}]   ;;  %s1445_s1 = inlined_call_operand.vmem [shape: f32[32,64], index: 1, kind: input, shape index: {}]   ;;  %s1446_s2 = inlined_call_operand.vmem [shape: f32[64,64], index: 2, kind: input, shape index: {}]   ;;  %s1447_s3 = inlined_call_operand.vmem [shape: f32[64,128], index: 3, kind: input, shape index: {}]   ;;  %s1448_s4 = inlined_call_operand.vmem [shape: f32[1,128], index: 4, kind: input, shape index: {}]   ;;  %s1449_s5 = inlined_call_operand.hbm [shape: f32[256,128], index: 5, kind: output, shape index: {}]  }
   0x1   :  { %12 = vsyncpa [#allocation3 + $0x1], 0  ;;  %s1208_s18 = smov 0   ;;  %s1210_s19 = smov 0  }
   0x2   :  { %s1212_s20 = smov 0   ;;  %s1214_s21 = smov 0  }
   0x3 LB: > { %s1229_s22 = sadd.s32 4294967295, %s1174_s21   ;;  %s893_s23 = sadd.s32 4294967294, %s1174_s21   ;;  %s1174_s21 = sphi %s1214_s21, %s1455_s21   ;;  %s1170_s20 = sphi %s1212_s20, %s1454_s20   ;;  %s1166_s19 = sphi %s1210_s19, %s1453_s19   ;;  %s1162_s18 = sphi %s1208_s18, %s1452_s18  }
   0x4   : > { %s1233_s24 = sadd.s32 1, %s1174_s21   ;;  %s135_s25 = sadd.s32 1, %s1170_s20 }
   0x5   : > { %s132_s26 = ssub.s32 %s1174_s21, %s1233_s24  ;;  %p145_p0 = scmp.ne.s32.totalorder %s1170_s20, %s1166_s19 }
   0x6   : > { %p133_p1 = scmp.eq.s32.totalorder %s132_s26, 0  ;;  %p146_p2 = scmp.eq.s32.totalorder %s1229_s22, 1 }
   0x7   : > { %p151_p3 = scmp.ne.s32.totalorder %s1166_s19, %s1162_s18  ;;  %p152_p4 = scmp.eq.s32.totalorder %s893_s23, 1 }
   0x8   : > { %s1244_s27 = scalar_select %p133_p1, %s1170_s20, %s135_s25  }
   0x9   : > { %p1246_p5 = por %p146_p2, %p145_p0  ;;  %p1250_p6 = por %p152_p4, %p151_p3 }
   0xa   : > { %p896_p7 = scmp.ge.s32.totalorder %s1174_s21, 1  ;;  %p191_p8 = scmp.lt.s32.totalorder %s1174_s21, 3 }
   0xc   : > { %p192_p9 = pnand %p896_p7, %p191_p8 }
   0xd   : > { %s898_s9 = sshll.u32 (!%p192_p9), %s1229_s22, 4  ;;  %s216_s23 = sand.u32 (!%p192_p9), 1, %s1166_s19  }
   0xe   : > { %195 = sbr.rel (%p192_p9) target bundleno = 571 (0x23b), region = 40  ;;  %p220_p10 = scmp.lt.s32.totalorder (!%p192_p9), %s898_s9, 31 }
   0xf   : > { %s897_s25 = sshll.u32 (!%p192_p9), %s216_s23, 7  ;;  %s985_s7 = sshll.u32 (!%p192_p9), %s1229_s22, 7 }
  0x10   : > { %s1392_s6 = scalar_lea.vmem (!%p192_p9), [#allocation2], %s897_s25  ;;  %s827_s10 = scalar_lea.hbm (!%p192_p9), %s1449_s5, %s985_s7 }
  0x11   : > { %s828_s11 = sshll.u32 (!%p192_p9), %s1392_s6, 4  ;;  %s830_s12 = sshll.u32 (!%p192_p9), %s827_s10, 4  ;;  %s829_s11 = int_to_ptr.vmem [resolvable:$true] %s828_s11  ;;  %s831_s12 = int_to_ptr.hbm [resolvable:$true] %s830_s12 }
  0x12   : > { %s816_s13 = scalar_lea.sflag (!%p192_p9), [#allocation3], %s216_s23 }
  0x13   : > { %v245_v0 = vld [vmem:[%s1445_s1 + $0x18] sm:$0xff]  ;;  %v244_v1 = vld [vmem:[%s1445_s1 + $0x10] sm:$0xff]  ;;  %v243_v2 = vld [vmem:[%s1445_s1 + $0x8] sm:$0xff]  ;;  %s1457_s9 = smov (!%p220_p10, %s898_s9), 31  ;;  %vm246_vm0 = vcmask 261120   ;;  %vm464_vm1 = vcmask 523264  }
  0x14   : > { %307 = vmatpush.msra.mxu0 %v245_v0  ;;  %986 = vmatpush.msra.mxu3 %v245_v0  ;;  %v242_v3 = vld [vmem:[%s1445_s1] sm:$0xff]  ;;  %s899_s14 = sshll.u32 %s1457_s9, 3  ;;  %v463_v19 = vld [vmem:[%s1446_s2 + $0x38] sm:$0xff]  ;;  %v462_v21 = vld [vmem:[%s1446_s2 + $0x30] sm:$0xff] }
  0x15   : > { %s1272_s17 = scalar_lea.vmem %s1444_s0, %s899_s14  ;;  %521 = vmatpush.msra.mxu1 %v463_v19  ;;  %v461_v22 = vld [vmem:[%s1446_s2 + $0x28] sm:$0xff]  ;;  %v460_v23 = vld [vmem:[%s1446_s2 + $0x20] sm:$0xff]  ;;  %v459_v24 = vld [vmem:[%s1446_s2 + $0x18] sm:$0xff]  ;;  %s1126_s14 = sshra.s32 %s831_s12, 4  ;;  %s1127_s14 = int_to_ptr.hbm [resolvable:$true] %s1126_s14 }
  0x16   : > { %308 = vmatpush.msra.mxu0 %v244_v1  ;;  %987 = vmatpush.msra.mxu3 %v244_v1  ;;  %v226_v4 = vld [vmem:[%s1272_s17] sm:$0xff]  ;;  %v227_v5 = vld [vmem:[%s1272_s17 + $0x8] sm:$0xff]  ;;  %v228_v6 = vld [vmem:[%s1272_s17 + $0x10] sm:$0xff]  ;;  %s1128_s22 = scalar_lea.hbm %s1127_s14, 128  ;;  %p1133_p0 = scmp.lt.s32.totalorder %s1127_s14, %s1449_s5 }
  0x17   : > { %v229_v7 = vld [vmem:[%s1272_s17 + $0x18] sm:$0xff]  ;;  %v230_v8 = vld [vmem:[%s1272_s17 + $0x20] sm:$0xff]  ;;  %v231_v9 = vld [vmem:[%s1272_s17 + $0x28] sm:$0xff]  ;;  %522 = vmatpush.msra.mxu1 %v462_v21  ;;  %p1129_p11 = scmp.ne.s32.totalorder %s1127_s14, %s1128_s22 }
  0x18   : > { %309 = vmatpush.msra.mxu0 %v243_v2  ;;  %988 = vmatpush.msra.mxu3 %v243_v2  ;;  %v232_v10 = vld [vmem:[%s1272_s17 + $0x30] sm:$0xff]  ;;  %v239_v11 = vld [vmem:[%s1272_s17 + $0x68] sm:$0xff]  ;;  %v233_v12 = vld [vmem:[%s1272_s17 + $0x38] sm:$0xff] }
  0x19   : > { %v240_v13 = vld [vmem:[%s1272_s17 + $0x70] sm:$0xff]  ;;  %v234_v14 = vld [vmem:[%s1272_s17 + $0x40] sm:$0xff]  ;;  %v241_v15 = vld [vmem:[%s1272_s17 + $0x78] sm:$0xff]  ;;  %523 = vmatpush.msra.mxu1 %v461_v22  ;;  %p1130_p12 = pnand %p1129_p11, %p1246_p5 }
  0x1a   : > { %310 = vmatpush.msra.mxu0 %v242_v3  ;;  %989 = vmatpush.msra.mxu3 %v242_v3  ;;  %v235_v16 = vld [vmem:[%s1272_s17 + $0x48] sm:$0xff]  ;;  %v236_v17 = vld [vmem:[%s1272_s17 + $0x50] sm:$0xff]  ;;  %v237_v18 = vld [vmem:[%s1272_s17 + $0x58] sm:$0xff] }
  0x1b   : > { %900 = vmatmul.msk.f32.vlgmr.msra.gmra.mxu0 %vm246_vm0, %v226_v4  ;;  %913 = vmatmul.msk.f32.vlgmr.msra.gmra.mxu3 %vm246_vm0, %v239_v11  ;;  %v238_v20 = vld [vmem:[%s1272_s17 + $0x60] sm:$0xff]  ;;  %v458_v25 = vld [vmem:[%s1446_s2 + $0x10] sm:$0xff]  ;;  %v457_v26 = vld [vmem:[%s1446_s2 + $0x8] sm:$0xff]  ;;  %p1131_p13 = pneg %p1130_p12  ;;  %s1132_s17 = scalar_lea.hbm %s1449_s5, 256 }
  0x1c   : > { %990 = vmatpush.msrb.mxu3 %v463_v19  ;;  %524 = vmatpush.msra.mxu1 %v460_v23  ;;  %v456_v27 = vld [vmem:[%s1446_s2] sm:$0xff]  ;;  %p1134_p1 = scmp.lt.s32.totalorder %s1132_s17, %s1128_s22 }
  0x1e   : > { %991 = vmatpush.msrb.mxu3 %v462_v21  ;;  %525 = vmatpush.msra.mxu1 %v459_v24  ;;  %p1135_p2 = por %p1134_p1, %p1133_p0 }
  0x20   : > { %992 = vmatpush.msrb.mxu3 %v461_v22  ;;  %526 = vmatpush.msra.mxu1 %v458_v25  ;;  %p1136_p3 = pnand %p1135_p2, %p1131_p13 }
  0x22   : > { %993 = vmatpush.msrb.mxu3 %v460_v23  ;;  %527 = vmatpush.msra.mxu1 %v457_v26 }
  0x23   : > { %901 = vmatmul.msk.f32.gmra.mxu0 %vm246_vm0, %v227_v5  ;;  %914 = vmatmul.msk.f32.gmra.mxu3 %vm246_vm0, %v240_v13 }
  0x24   : > { %994 = vmatpush.msrb.mxu3 %v459_v24  ;;  %528 = vmatpush.msra.mxu1 %v456_v27 }
  0x26   : > { %995 = vmatpush.msrb.mxu3 %v458_v25 }
  0x28   : > { %996 = vmatpush.msrb.mxu3 %v457_v26 }
  0x2a   : > { %997 = vmatpush.msrb.mxu3 %v456_v27 }
  0x2b   : > { %902 = vmatmul.msk.f32.gmra.mxu0 %vm246_vm0, %v228_v6  ;;  %915 = vmatmul.msk.f32.gmra.mxu3 %vm246_vm0, %v241_v15 }
  0x33   : > { %903 = vmatmul.msk.f32.gmra.mxu0 %vm246_vm0, %v229_v7 }
  0x3b   : > { %904 = vmatmul.msk.f32.gmra.mxu0 %vm246_vm0, %v230_v8 }
  0x43   : > { %905 = vmatmul.msk.f32.gmra.mxu0 %vm246_vm0, %v231_v9 }
  0x4b   : > { %906 = vmatmul.msk.f32.gmra.mxu0 %vm246_vm0, %v232_v10 }
  0x53   : > { %907 = vmatmul.msk.f32.gmra.mxu0 %vm246_vm0, %v233_v12 }
  0x5b   : > { %908 = vmatmul.msk.f32.gmra.mxu0 %vm246_vm0, %v234_v14 }
  0x63   : > { %909 = vmatmul.msk.f32.gmra.mxu0 %vm246_vm0, %v235_v16 }
  0x6b   : > { %910 = vmatmul.msk.f32.gmra.mxu0 %vm246_vm0, %v236_v17 }
  0x73   : > { %911 = vmatmul.msk.f32.gmra.mxu0 %vm246_vm0, %v237_v18 }
  0x7b   : > { %912 = vmatmul.msk.f32.gmra.mxu0 %vm246_vm0, %v238_v20 }
  0x98   : > { %v312_v28 = vpop.f32.mrf.mxu0 }
  0x99   : > { %v376_v29 = vmul.f32 1.442695, %v312_v28  ;;  %vm360_vm2 = vcmp.gt.f32.partialorder %v312_v28, 0.0 }
  0x9b   : > { %1048 = vpow2.f32 %v376_v29 }
  0xa0   : > { %v315_v30 = vpop.f32.mrf.mxu0 }
  0xa1   : > { %v1049_v31 = vpop.eup %1048  ;;  %v378_v32 = vmul.f32 1.442695, %v315_v30  ;;  %vm361_vm3 = vcmp.gt.f32.partialorder %v315_v30, 0.0 }
  0xa2   : > { %v916_v33 = vadd.f32 -1.0, %v1049_v31 }
  0xa3   : > { %1050 = vpow2.f32 %v378_v32 }
  0xa4   : > { %v424_v34 = vmul.f32 1.6732632, %v916_v33 }
  0xa6   : > { %v440_v35 = vsel %vm360_vm2, %v312_v28, %v424_v34 }
  0xa7   : > { %932 = vmatmul.msk.f32.vlgmr.msra.gmra.mxu1 %vm464_vm1, %v440_v35 }
  0xa8   : > { %v318_v36 = vpop.f32.mrf.mxu0 }
  0xa9   : > { %v1051_v37 = vpop.eup %1050  ;;  %v380_v38 = vmul.f32 1.442695, %v318_v36  ;;  %vm362_vm4 = vcmp.gt.f32.partialorder %v318_v36, 0.0 }
  0xaa   : > { %v917_v39 = vadd.f32 -1.0, %v1051_v37 }
  0xab   : > { %1052 = vpow2.f32 %v380_v38 }
  0xac   : > { %v425_v40 = vmul.f32 1.6732632, %v917_v39 }
  0xae   : > { %v441_v41 = vsel %vm361_vm3, %v315_v30, %v425_v40  ;;  %v351_v30 = vpop.f32.mrf.mxu3 }
  0xaf   : > { %933 = vmatmul.msk.f32.gmra.mxu1 %vm464_vm1, %v441_v41  ;;  %v402_v35 = vmul.f32 1.442695, %v351_v30  ;;  %vm373_vm15 = vcmp.gt.f32.partialorder %v351_v30, 0.0 }
  0xb0   : > { %v321_v42 = vpop.f32.mrf.mxu0 }
  0xb1   : > { %v1053_v43 = vpop.eup %1052  ;;  %v382_v44 = vmul.f32 1.442695, %v321_v42  ;;  %vm363_vm5 = vcmp.gt.f32.partialorder %v321_v42, 0.0 }
  0xb2   : > { %v918_v45 = vadd.f32 -1.0, %v1053_v43 }
  0xb3   : > { %1054 = vpow2.f32 %v382_v44 }
  0xb4   : > { %v426_v46 = vmul.f32 1.6732632, %v918_v45  ;;  %v681_v45 = vld [vmem:[%s1447_s3 + $0x38] sm:$0xff] }
  0xb5   : > { %742 = vmatpush.msra.mxu2 %v681_v45  ;;  %998 = vmatpush.msra.mxu3 %v681_v45 }
  0xb6   : > { %v442_v47 = vsel %vm362_vm4, %v318_v36, %v426_v46  ;;  %v354_v38 = vpop.f32.mrf.mxu3 }
  0xb7   : > { %934 = vmatmul.msk.f32.gmra.mxu1 %vm464_vm1, %v442_v47  ;;  %v680_v47 = vld [vmem:[%s1447_s3 + $0x30] sm:$0xff]  ;;  %vm374_vm0 = vcmp.gt.f32.partialorder %v354_v38, 0.0 }
  0xb8   : > { %v324_v48 = vpop.f32.mrf.mxu0  ;;  %743 = vmatpush.msra.mxu2 %v680_v47  ;;  %999 = vmatpush.msra.mxu3 %v680_v47 }
  0xb9   : > { %v1055_v49 = vpop.eup %1054  ;;  %v384_v50 = vmul.f32 1.442695, %v324_v48  ;;  %vm364_vm6 = vcmp.gt.f32.partialorder %v324_v48, 0.0 }
  0xba   : > { %v919_v51 = vadd.f32 -1.0, %v1055_v49 }
  0xbb   : > { %1056 = vpow2.f32 %v384_v50 }
  0xbc   : > { %v427_v52 = vmul.f32 1.6732632, %v919_v51  ;;  %v679_v51 = vld [vmem:[%s1447_s3 + $0x28] sm:$0xff] }
  0xbd   : > { %744 = vmatpush.msra.mxu2 %v679_v51  ;;  %1000 = vmatpush.msra.mxu3 %v679_v51 }
  0xbe   : > { %v443_v53 = vsel %vm363_vm5, %v321_v42, %v427_v52  ;;  %v404_v42 = vmul.f32 1.442695, %v354_v38  ;;  %v357_v50 = vpop.f32.mrf.mxu3 }
  0xbf   : > { %935 = vmatmul.msk.f32.gmra.mxu1 %vm464_vm1, %v443_v53  ;;  %v406_v52 = vmul.f32 1.442695, %v357_v50  ;;  %v678_v53 = vld [vmem:[%s1447_s3 + $0x20] sm:$0xff]  ;;  %vm375_vm2 = vcmp.gt.f32.partialorder %v357_v50, 0.0 }
  0xc0   : > { %v327_v54 = vpop.f32.mrf.mxu0  ;;  %745 = vmatpush.msra.mxu2 %v678_v53  ;;  %1001 = vmatpush.msra.mxu3 %v678_v53 }
  0xc1   : > { %v1057_v55 = vpop.eup %1056  ;;  %v386_v56 = vmul.f32 1.442695, %v327_v54  ;;  %vm365_vm7 = vcmp.gt.f32.partialorder %v327_v54, 0.0 }
  0xc2   : > { %v920_v57 = vadd.f32 -1.0, %v1057_v55 }
  0xc3   : > { %1058 = vpow2.f32 %v386_v56  ;;  %v677_v56 = vld [vmem:[%s1447_s3 + $0x18] sm:$0xff] }
  0xc4   : > { %v428_v58 = vmul.f32 1.6732632, %v920_v57  ;;  %746 = vmatpush.msra.mxu2 %v677_v56  ;;  %1002 = vmatpush.msra.mxu3 %v677_v56  ;;  %v676_v57 = vld [vmem:[%s1447_s3 + $0x10] sm:$0xff] }
  0xc6   : > { %v444_v59 = vsel %vm364_vm6, %v324_v48, %v428_v58  ;;  %747 = vmatpush.msra.mxu2 %v676_v57  ;;  %1003 = vmatpush.msra.mxu3 %v676_v57 }
  0xc7   : > { %936 = vmatmul.msk.f32.gmra.mxu1 %vm464_vm1, %v444_v59 }
  0xc8   : > { %v330_v60 = vpop.f32.mrf.mxu0 }
  0xc9   : > { %v1059_v61 = vpop.eup %1058  ;;  %v388_v62 = vmul.f32 1.442695, %v330_v60  ;;  %vm366_vm8 = vcmp.gt.f32.partialorder %v330_v60, 0.0 }
  0xca   : > { %v921_v63 = vadd.f32 -1.0, %v1059_v61  ;;  %v674_v61 = vld [vmem:[%s1447_s3] sm:$0xff] }
  0xcb   : > { %1060 = vpow2.f32 %v388_v62 }
  0xcc   : > { %v429_v0 = vmul.f32 1.6732632, %v921_v63 }
  0xce   : > { %v445_v1 = vsel %vm365_vm7, %v327_v54, %v429_v0 }
  0xcf   : > { %937 = vmatmul.msk.f32.gmra.mxu1 %vm464_vm1, %v445_v1 }
  0xd0   : > { %v333_v2 = vpop.f32.mrf.mxu0 }
  0xd1   : > { %v1061_v3 = vpop.eup %1060  ;;  %v390_v4 = vmul.f32 1.442695, %v333_v2  ;;  %vm367_vm9 = vcmp.gt.f32.partialorder %v333_v2, 0.0 }
  0xd2   : > { %v922_v5 = vadd.f32 -1.0, %v1061_v3 }
  0xd3   : > { %1062 = vpow2.f32 %v390_v4 }
  0xd4   : > { %v430_v6 = vmul.f32 1.6732632, %v922_v5 }
  0xd6   : > { %v446_v7 = vsel %vm366_vm8, %v330_v60, %v430_v6  ;;  %v675_v60 = vld [vmem:[%s1447_s3 + $0x8] sm:$0xff] }
  0xd7   : > { %938 = vmatmul.msk.f32.gmra.mxu1 %vm464_vm1, %v446_v7  ;;  %748 = vmatpush.msra.mxu2 %v675_v60 }
  0xd8   : > { %v336_v8 = vpop.f32.mrf.mxu0  ;;  %1004 = vmatpush.msra.mxu3 %v675_v60 }
  0xd9   : > { %v1063_v9 = vpop.eup %1062  ;;  %v392_v10 = vmul.f32 1.442695, %v336_v8  ;;  %vm368_vm10 = vcmp.gt.f32.partialorder %v336_v8, 0.0  ;;  %749 = vmatpush.msra.mxu2 %v674_v61 }
  0xda   : > { %v923_v11 = vadd.f32 -1.0, %v1063_v9  ;;  %1005 = vmatpush.msra.mxu3 %v674_v61 }
  0xdb   : > { %1064 = vpow2.f32 %v392_v10 }
  0xdc   : > { %v431_v12 = vmul.f32 1.6732632, %v923_v11 }
  0xde   : > { %v447_v13 = vsel %vm367_vm9, %v333_v2, %v431_v12 }
  0xdf   : > { %939 = vmatmul.msk.f32.gmra.mxu1 %vm464_vm1, %v447_v13 }
  0xe0   : > { %v339_v14 = vpop.f32.mrf.mxu0 }
  0xe1   : > { %v1065_v15 = vpop.eup %1064  ;;  %v394_v16 = vmul.f32 1.442695, %v339_v14  ;;  %vm369_vm11 = vcmp.gt.f32.partialorder %v339_v14, 0.0 }
  0xe2   : > { %v924_v17 = vadd.f32 -1.0, %v1065_v15 }
  0xe3   : > { %1066 = vpow2.f32 %v394_v16 }
  0xe4   : > { %v432_v18 = vmul.f32 1.6732632, %v924_v17 }
  0xe6   : > { %v448_v19 = vsel %vm368_vm10, %v336_v8, %v432_v18 }
  0xe7   : > { %940 = vmatmul.msk.f32.gmra.mxu1 %vm464_vm1, %v448_v19 }
  0xe8   : > { %v342_v20 = vpop.f32.mrf.mxu0 }
  0xe9   : > { %v1067_v21 = vpop.eup %1066  ;;  %v396_v22 = vmul.f32 1.442695, %v342_v20  ;;  %vm370_vm12 = vcmp.gt.f32.partialorder %v342_v20, 0.0 }
  0xea   : > { %v925_v23 = vadd.f32 -1.0, %v1067_v21 }
  0xeb   : > { %1068 = vpow2.f32 %v396_v22 }
  0xec   : > { %v433_v24 = vmul.f32 1.6732632, %v925_v23 }
  0xee   : > { %v449_v25 = vsel %vm369_vm11, %v339_v14, %v433_v24 }
  0xef   : > { %941 = vmatmul.msk.f32.gmra.mxu1 %vm464_vm1, %v449_v25 }
  0xf0   : > { %v345_v26 = vpop.f32.mrf.mxu0 }
  0xf1   : > { %v1069_v27 = vpop.eup %1068  ;;  %v398_v28 = vmul.f32 1.442695, %v345_v26  ;;  %vm371_vm13 = vcmp.gt.f32.partialorder %v345_v26, 0.0 }
  0xf2   : > { %v926_v29 = vadd.f32 -1.0, %v1069_v27 }
  0xf3   : > { %1070 = vpow2.f32 %v398_v28 }
  0xf4   : > { %v434_v31 = vmul.f32 1.6732632, %v926_v29 }
  0xf6   : > { %v450_v32 = vsel %vm370_vm12, %v342_v20, %v434_v31 }
  0xf7   : > { %942 = vmatmul.msk.f32.gmra.mxu1 %vm464_vm1, %v450_v32 }
  0xf8   : > { %v348_v33 = vpop.f32.mrf.mxu0 }
  0xf9   : > { %v1071_v34 = vpop.eup %1070  ;;  %v400_v36 = vmul.f32 1.442695, %v348_v33  ;;  %vm372_vm14 = vcmp.gt.f32.partialorder %v348_v33, 0.0 }
  0xfa   : > { %v927_v37 = vadd.f32 -1.0, %v1071_v34 }
  0xfb   : > { %1072 = vpow2.f32 %v400_v36 }
  0xfc   : > { %v435_v39 = vmul.f32 1.6732632, %v927_v37  ;;  %1074 = vpow2.f32 %v402_v35 }
  0xfd   : > { %1076 = vpow2.f32 %v404_v42 }
  0xfe   : > { %v451_v40 = vsel %vm371_vm13, %v345_v26, %v435_v39  ;;  %1078 = vpow2.f32 %v406_v52 }
  0xff   : > { %943 = vmatmul.msk.f32.gmra.mxu1 %vm464_vm1, %v451_v40 }
 0x101   : > { %v1073_v41 = vpop.eup %1072 }
 0x102   : > { %v928_v43 = vadd.f32 -1.0, %v1073_v41  ;;  %v1075_v44 = vpop.eup %1074 }
 0x103   : > { %v929_v48 = vadd.f32 -1.0, %v1075_v44  ;;  %v1077_v55 = vpop.eup %1076 }
 0x104   : > { %v436_v46 = vmul.f32 1.6732632, %v928_v43  ;;  %v930_v58 = vadd.f32 -1.0, %v1077_v55  ;;  %v1079_v63 = vpop.eup %1078 }
 0x105   : > { %v437_v54 = vmul.f32 1.6732632, %v929_v48  ;;  %v931_v0 = vadd.f32 -1.0, %v1079_v63 }
 0x106   : > { %v452_v49 = vsel %vm372_vm14, %v348_v33, %v436_v46  ;;  %v438_v62 = vmul.f32 1.6732632, %v930_v58 }
 0x107   : > { %944 = vmatmul.msk.f32.vlgmr.msrb.gmra.mxu3 %vm464_vm1, %v452_v49  ;;  %v453_v59 = vsel %vm373_vm15, %v351_v30, %v437_v54  ;;  %v439_v2 = vmul.f32 1.6732632, %v931_v0 }
 0x108   : > { %v454_v1 = vsel %vm374_vm0, %v354_v38, %v438_v62 }
 0x109   : > { %v455_v3 = vsel %vm375_vm2, %v357_v50, %v439_v2 }
 0x10f   : > { %945 = vmatmul.msk.f32.gmra.mxu3 %vm464_vm1, %v453_v59 }
 0x117   : > { %946 = vmatmul.msk.f32.gmra.mxu3 %vm464_vm1, %v454_v1 }
 0x11f   : > { %947 = vmatmul.msk.f32.gmra.mxu3 %vm464_vm1, %v455_v3 }
 0x124   : > { %v530_v4 = vpop.f32.mrf.mxu1 }
 0x125   : > { %v594_v5 = vmul.f32 1.442695, %v530_v4  ;;  %vm578_vm3 = vcmp.gt.f32.partialorder %v530_v4, 0.0 }
 0x127   : > { %1080 = vpow2.f32 %v594_v5 }
 0x12c   : > { %v533_v6 = vpop.f32.mrf.mxu1 }
 0x12d   : > { %v1081_v7 = vpop.eup %1080  ;;  %v596_v8 = vmul.f32 1.442695, %v533_v6  ;;  %vm579_vm4 = vcmp.gt.f32.partialorder %v533_v6, 0.0 }
 0x12e   : > { %v948_v9 = vadd.f32 -1.0, %v1081_v7 }
 0x12f   : > { %1082 = vpow2.f32 %v596_v8 }
 0x130   : > { %v642_v10 = vmul.f32 1.6732632, %v948_v9 }
 0x132   : > { %v658_v11 = vsel %vm578_vm3, %v530_v4, %v642_v10 }
 0x133   : > { %964 = vmatmul.msk.f32.vlgmr.msra.gmra.mxu2 %vm464_vm1, %v658_v11 }
 0x134   : > { %v536_v12 = vpop.f32.mrf.mxu1 }
 0x135   : > { %v1083_v13 = vpop.eup %1082  ;;  %v598_v14 = vmul.f32 1.442695, %v536_v12  ;;  %vm580_vm5 = vcmp.gt.f32.partialorder %v536_v12, 0.0 }
 0x136   : > { %v949_v15 = vadd.f32 -1.0, %v1083_v13 }
 0x137   : > { %1084 = vpow2.f32 %v598_v14 }
 0x138   : > { %v643_v16 = vmul.f32 1.6732632, %v949_v15 }
 0x13a   : > { %v659_v17 = vsel %vm579_vm4, %v533_v6, %v643_v16 }
 0x13b   : > { %965 = vmatmul.msk.f32.gmra.mxu2 %vm464_vm1, %v659_v17 }
 0x13c   : > { %v539_v18 = vpop.f32.mrf.mxu1 }
 0x13d   : > { %v1085_v19 = vpop.eup %1084  ;;  %v600_v20 = vmul.f32 1.442695, %v539_v18  ;;  %vm581_vm6 = vcmp.gt.f32.partialorder %v539_v18, 0.0 }
 0x13e   : > { %v950_v21 = vadd.f32 -1.0, %v1085_v19 }
 0x13f   : > { %1086 = vpow2.f32 %v600_v20 }
 0x140   : > { %v644_v22 = vmul.f32 1.6732632, %v950_v21 }
 0x142   : > { %v660_v23 = vsel %vm580_vm5, %v536_v12, %v644_v22 }
 0x143   : > { %966 = vmatmul.msk.f32.gmra.mxu2 %vm464_vm1, %v660_v23 }
 0x144   : > { %v542_v24 = vpop.f32.mrf.mxu1 }
 0x145   : > { %v1087_v25 = vpop.eup %1086  ;;  %v602_v26 = vmul.f32 1.442695, %v542_v24  ;;  %vm582_vm7 = vcmp.gt.f32.partialorder %v542_v24, 0.0 }
 0x146   : > { %v951_v27 = vadd.f32 -1.0, %v1087_v25 }
 0x147   : > { %1088 = vpow2.f32 %v602_v26 }
 0x148   : > { %v645_v28 = vmul.f32 1.6732632, %v951_v27 }
 0x14a   : > { %v661_v29 = vsel %vm581_vm6, %v539_v18, %v645_v28 }
 0x14b   : > { %967 = vmatmul.msk.f32.gmra.mxu2 %vm464_vm1, %v661_v29 }
 0x14c   : > { %v545_v30 = vpop.f32.mrf.mxu1 }
 0x14d   : > { %v1089_v31 = vpop.eup %1088  ;;  %v604_v32 = vmul.f32 1.442695, %v545_v30  ;;  %vm583_vm8 = vcmp.gt.f32.partialorder %v545_v30, 0.0 }
 0x14e   : > { %v952_v33 = vadd.f32 -1.0, %v1089_v31 }
 0x14f   : > { %1090 = vpow2.f32 %v604_v32 }
 0x150   : > { %v646_v34 = vmul.f32 1.6732632, %v952_v33 }
 0x152   : > { %v662_v35 = vsel %vm582_vm7, %v542_v24, %v646_v34 }
 0x153   : > { %968 = vmatmul.msk.f32.gmra.mxu2 %vm464_vm1, %v662_v35 }
 0x154   : > { %v548_v36 = vpop.f32.mrf.mxu1 }
 0x155   : > { %v1091_v37 = vpop.eup %1090  ;;  %v606_v38 = vmul.f32 1.442695, %v548_v36  ;;  %vm584_vm9 = vcmp.gt.f32.partialorder %v548_v36, 0.0 }
 0x156   : > { %v953_v39 = vadd.f32 -1.0, %v1091_v37 }
 0x157   : > { %1092 = vpow2.f32 %v606_v38 }
 0x158   : > { %v647_v40 = vmul.f32 1.6732632, %v953_v39 }
 0x15a   : > { %v663_v41 = vsel %vm583_vm8, %v545_v30, %v647_v40 }
 0x15b   : > { %969 = vmatmul.msk.f32.gmra.mxu2 %vm464_vm1, %v663_v41 }
 0x15c   : > { %v551_v42 = vpop.f32.mrf.mxu1 }
 0x15d   : > { %v1093_v43 = vpop.eup %1092  ;;  %v608_v44 = vmul.f32 1.442695, %v551_v42  ;;  %vm585_vm10 = vcmp.gt.f32.partialorder %v551_v42, 0.0 }
 0x15e   : > { %v954_v45 = vadd.f32 -1.0, %v1093_v43 }
 0x15f   : > { %1094 = vpow2.f32 %v608_v44 }
 0x160   : > { %v648_v46 = vmul.f32 1.6732632, %v954_v45 }
 0x162   : > { %v664_v47 = vsel %vm584_vm9, %v548_v36, %v648_v46  ;;  %v1047_v36 = vld [vmem:[%s1448_s4] ss:$0 sm:$0xff] }
 0x163   : > { %970 = vmatmul.msk.f32.gmra.mxu2 %vm464_vm1, %v664_v47 }
 0x164   : > { %v554_v48 = vpop.f32.mrf.mxu1 }
 0x165   : > { %v1095_v49 = vpop.eup %1094  ;;  %v610_v50 = vmul.f32 1.442695, %v554_v48  ;;  %vm586_vm11 = vcmp.gt.f32.partialorder %v554_v48, 0.0 }
 0x166   : > { %v955_v51 = vadd.f32 -1.0, %v1095_v49 }
 0x167   : > { %1096 = vpow2.f32 %v610_v50 }
 0x168   : > { %v649_v52 = vmul.f32 1.6732632, %v955_v51 }
 0x16a   : > { %v665_v53 = vsel %vm585_vm10, %v551_v42, %v649_v52 }
 0x16b   : > { %971 = vmatmul.msk.f32.gmra.mxu2 %vm464_vm1, %v665_v53 }
 0x16c   : > { %v557_v54 = vpop.f32.mrf.mxu1 }
 0x16d   : > { %v1097_v55 = vpop.eup %1096  ;;  %v612_v56 = vmul.f32 1.442695, %v557_v54  ;;  %vm587_vm12 = vcmp.gt.f32.partialorder %v557_v54, 0.0 }
 0x16e   : > { %v956_v57 = vadd.f32 -1.0, %v1097_v55 }
 0x16f   : > { %1098 = vpow2.f32 %v612_v56 }
 0x170   : > { %v650_v58 = vmul.f32 1.6732632, %v956_v57 }
 0x172   : > { %v666_v59 = vsel %vm586_vm11, %v554_v48, %v650_v58 }
 0x173   : > { %972 = vmatmul.msk.f32.gmra.mxu2 %vm464_vm1, %v666_v59 }
 0x174   : > { %v560_v60 = vpop.f32.mrf.mxu1 }
 0x175   : > { %v1099_v61 = vpop.eup %1098  ;;  %v614_v62 = vmul.f32 1.442695, %v560_v60  ;;  %vm588_vm13 = vcmp.gt.f32.partialorder %v560_v60, 0.0 }
 0x176   : > { %v957_v63 = vadd.f32 -1.0, %v1099_v61 }
 0x177   : > { %1100 = vpow2.f32 %v614_v62 }
 0x178   : > { %v651_v0 = vmul.f32 1.6732632, %v957_v63 }
 0x17a   : > { %v667_v1 = vsel %vm587_vm12, %v557_v54, %v651_v0 }
 0x17b   : > { %973 = vmatmul.msk.f32.gmra.mxu2 %vm464_vm1, %v667_v1 }
 0x17c   : > { %v563_v2 = vpop.f32.mrf.mxu1 }
 0x17d   : > { %v1101_v3 = vpop.eup %1100  ;;  %v616_v4 = vmul.f32 1.442695, %v563_v2  ;;  %vm589_vm14 = vcmp.gt.f32.partialorder %v563_v2, 0.0 }
 0x17e   : > { %v958_v5 = vadd.f32 -1.0, %v1101_v3 }
 0x17f   : > { %1102 = vpow2.f32 %v616_v4 }
 0x180   : > { %v652_v6 = vmul.f32 1.6732632, %v958_v5 }
 0x182   : > { %v668_v7 = vsel %vm588_vm13, %v560_v60, %v652_v6 }
 0x183   : > { %974 = vmatmul.msk.f32.gmra.mxu2 %vm464_vm1, %v668_v7 }
 0x185   : > { %v1103_v8 = vpop.eup %1102 }
 0x186   : > { %v959_v9 = vadd.f32 -1.0, %v1103_v8 }
 0x188   : > { %v653_v10 = vmul.f32 1.6732632, %v959_v9 }
 0x18a   : > { %v566_v11 = vpop.f32.mrf.mxu3  ;;  %v669_v12 = vsel %vm589_vm14, %v563_v2, %v653_v10 }
 0x18b   : > { %v618_v13 = vmul.f32 1.442695, %v566_v11  ;;  %975 = vmatmul.msk.f32.gmra.mxu2 %vm464_vm1, %v669_v12  ;;  %vm590_vm15 = vcmp.gt.f32.partialorder %v566_v11, 0.0 }
 0x18d   : > { %1104 = vpow2.f32 %v618_v13 }
 0x192   : > { %v569_v14 = vpop.f32.mrf.mxu3 }
 0x193   : > { %v1105_v15 = vpop.eup %1104  ;;  %v620_v16 = vmul.f32 1.442695, %v569_v14  ;;  %vm591_vm0 = vcmp.gt.f32.partialorder %v569_v14, 0.0 }
 0x194   : > { %v960_v17 = vadd.f32 -1.0, %v1105_v15 }
 0x195   : > { %1106 = vpow2.f32 %v620_v16 }
 0x196   : > { %v654_v18 = vmul.f32 1.6732632, %v960_v17 }
 0x198   : > { %v670_v19 = vsel %vm590_vm15, %v566_v11, %v654_v18 }
 0x199   : > { %976 = vmatmul.msk.f32.vlgmr.msra.gmra.mxu3 %vm464_vm1, %v670_v19 }
 0x19a   : > { %v572_v20 = vpop.f32.mrf.mxu3 }
 0x19b   : > { %v1107_v21 = vpop.eup %1106  ;;  %v622_v22 = vmul.f32 1.442695, %v572_v20  ;;  %vm592_vm2 = vcmp.gt.f32.partialorder %v572_v20, 0.0 }
 0x19c   : > { %v961_v23 = vadd.f32 -1.0, %v1107_v21 }
 0x19d   : > { %1108 = vpow2.f32 %v622_v22 }
 0x19e   : > { %v655_v24 = vmul.f32 1.6732632, %v961_v23 }
 0x1a0   : > { %v671_v25 = vsel %vm591_vm0, %v569_v14, %v655_v24 }
 0x1a1   : > { %977 = vmatmul.msk.f32.gmra.mxu3 %vm464_vm1, %v671_v25 }
 0x1a2   : > { %v575_v26 = vpop.f32.mrf.mxu3 }
 0x1a3   : > { %v1109_v27 = vpop.eup %1108  ;;  %v624_v28 = vmul.f32 1.442695, %v575_v26  ;;  %vm593_vm3 = vcmp.gt.f32.partialorder %v575_v26, 0.0 }
 0x1a4   : > { %v962_v29 = vadd.f32 -1.0, %v1109_v27 }
 0x1a5   : > { %1110 = vpow2.f32 %v624_v28 }
 0x1a6   : > { %v656_v30 = vmul.f32 1.6732632, %v962_v29 }
 0x1a8   : > { %v672_v31 = vsel %vm592_vm2, %v572_v20, %v656_v30 }
 0x1a9   : > { %978 = vmatmul.msk.f32.gmra.mxu3 %vm464_vm1, %v672_v31 }
 0x1ab   : > { %v1111_v32 = vpop.eup %1110 }
 0x1ac   : > { %v963_v33 = vadd.f32 -1.0, %v1111_v32 }
 0x1ae   : > { %v657_v34 = vmul.f32 1.6732632, %v963_v33 }
 0x1b0   : > { %v673_v35 = vsel %vm593_vm3, %v575_v26, %v657_v34 }
 0x1b1   : > { %979 = vmatmul.msk.f32.gmra.mxu3 %vm464_vm1, %v673_v35 }
 0x1b6   : > { %v751_v37 = vpop.f32.mrf.mxu2 }
 0x1b7   : > { %v752_v38 = vadd.f32 %v1047_v36, %v751_v37 }
 0x1b9   : > { %799 = vst [vmem:[%s1392_s6] sm:$0xff] %v752_v38 }
 0x1be   : > { %v754_v39 = vpop.f32.mrf.mxu2 }
 0x1bf   : > { %v755_v40 = vadd.f32 %v1047_v36, %v754_v39 }
 0x1c1   : > { %800 = vst [vmem:[%s1392_s6 + $0x8] sm:$0xff] %v755_v40 }
 0x1c6   : > { %v757_v41 = vpop.f32.mrf.mxu2 }
 0x1c7   : > { %v758_v42 = vadd.f32 %v1047_v36, %v757_v41 }
 0x1c9   : > { %801 = vst [vmem:[%s1392_s6 + $0x10] sm:$0xff] %v758_v42 }
 0x1ce   : > { %v760_v43 = vpop.f32.mrf.mxu2 }
 0x1cf   : > { %v761_v44 = vadd.f32 %v1047_v36, %v760_v43 }
 0x1d1   : > { %802 = vst [vmem:[%s1392_s6 + $0x18] sm:$0xff] %v761_v44 }
 0x1d6   : > { %v763_v45 = vpop.f32.mrf.mxu2 }
 0x1d7   : > { %v764_v46 = vadd.f32 %v1047_v36, %v763_v45 }
 0x1d9   : > { %803 = vst [vmem:[%s1392_s6 + $0x20] sm:$0xff] %v764_v46 }
 0x1de   : > { %v766_v47 = vpop.f32.mrf.mxu2 }
 0x1df   : > { %v767_v48 = vadd.f32 %v1047_v36, %v766_v47 }
 0x1e1   : > { %804 = vst [vmem:[%s1392_s6 + $0x28] sm:$0xff] %v767_v48 }
 0x1e6   : > { %v769_v49 = vpop.f32.mrf.mxu2 }
 0x1e7   : > { %v770_v50 = vadd.f32 %v1047_v36, %v769_v49 }
 0x1e9   : > { %805 = vst [vmem:[%s1392_s6 + $0x30] sm:$0xff] %v770_v50 }
 0x1ee   : > { %v772_v51 = vpop.f32.mrf.mxu2 }
 0x1ef   : > { %v773_v52 = vadd.f32 %v1047_v36, %v772_v51 }
 0x1f1   : > { %806 = vst [vmem:[%s1392_s6 + $0x38] sm:$0xff] %v773_v52 }
 0x1f6   : > { %v775_v53 = vpop.f32.mrf.mxu2 }
 0x1f7   : > { %v776_v54 = vadd.f32 %v1047_v36, %v775_v53 }
 0x1f9   : > { %807 = vst [vmem:[%s1392_s6 + $0x40] sm:$0xff] %v776_v54 }
 0x1fe   : > { %v778_v55 = vpop.f32.mrf.mxu2 }
 0x1ff   : > { %v779_v56 = vadd.f32 %v1047_v36, %v778_v55 }
 0x201   : > { %808 = vst [vmem:[%s1392_s6 + $0x48] sm:$0xff] %v779_v56 }
 0x206   : > { %v781_v57 = vpop.f32.mrf.mxu2 }
 0x207   : > { %v782_v58 = vadd.f32 %v1047_v36, %v781_v57 }
 0x209   : > { %809 = vst [vmem:[%s1392_s6 + $0x50] sm:$0xff] %v782_v58 }
 0x20e   : > { %v784_v59 = vpop.f32.mrf.mxu2 }
 0x20f   : > { %v785_v60 = vadd.f32 %v1047_v36, %v784_v59 }
 0x211   : > { %810 = vst [vmem:[%s1392_s6 + $0x58] sm:$0xff] %v785_v60 }
 0x21c   : > { %v787_v61 = vpop.f32.mrf.mxu3 }
 0x21d   : > { %v788_v62 = vadd.f32 %v1047_v36, %v787_v61 }
 0x21f   : > { %811 = vst [vmem:[%s1392_s6 + $0x60] sm:$0xff] %v788_v62 }
 0x224   : > { %v790_v63 = vpop.f32.mrf.mxu3 }
 0x225   : > { %v791_v0 = vadd.f32 %v1047_v36, %v790_v63 }
 0x227   : > { %812 = vst [vmem:[%s1392_s6 + $0x68] sm:$0xff] %v791_v0 }
 0x22c   : > { %v793_v1 = vpop.f32.mrf.mxu3 }
 0x22d   : > { %v794_v2 = vadd.f32 %v1047_v36, %v793_v1 }
 0x22f   : > { %813 = vst [vmem:[%s1392_s6 + $0x70] sm:$0xff] %v794_v2 }
 0x234   : > { %v796_v3 = vpop.f32.mrf.mxu3 }
 0x235   : > { %v797_v4 = vadd.f32 %v1047_v36, %v796_v3 }
 0x237   : > { %814 = vst [vmem:[%s1392_s6 + $0x78] sm:$0xff] %v797_v4 }
 0x238   : > { %1139 = shalt.err (!%p1136_p3)
}
 0x239   : > { %s1176_s23 = smov 128   ;;  %s1177_s30 = smov 8  }
 0x23a   : > { %1006 = dma.vmem_to_hbm [thread:$0]  (%p1246_p5), %s829_s11, 2048, %s831_s12, %s816_s13, %s1176_s23, %s1176_s23, %s1177_s30  }
 0x23b PF: > { %p1012_p4 = scmp.ge.s32.totalorder %s1174_s21, 2  ;;  %s845_s6 = sand.u32 1, %s1162_s18  }
 0x23c   : > { %s846_s7 = scalar_lea.sflag [#allocation3], %s845_s6 }
 0x23d   : > { %p1009_p7 = pnand %p1012_p4, %p1250_p6 }
 0x23f   : > { %p1010_p8 = pneg %p1009_p7 }
 0x241   : > { %1157 = dma.done.wait (%p1010_p8), %s846_s7, 2048  }
 0x242   : > { %1159 = vsyncadd (%p1010_p8), %s846_s7, 4294965248  ;;  %p15_p9 = scmp.ge.s32.totalorder %s1233_s24, 4   ;;  %s1452_s18 = smov %s1166_s19 }
 0x243   : > { %s1453_s19 = smov %s1170_s20  ;;  %s1454_s20 = smov %s1244_s27 }
 0x244   : > { %s1455_s21 = smov %s1233_s24  ;;  %17 = sbr.rel (!%p15_p9) target bundleno = 3 (0x3), region = 75 }
 0x249   :  { %852 = vsyncpa [#allocation3], 1 }
 0x24a   :  { %854 = vsyncpa [#allocation3 + $0x1], 1 }

</bundles_post_ra>
